<compile_context>
chip_gen: v5e
topology: v5e:2x2
jax: 0.10.0
libtpu: 0.0.40
codegen_flags: <defaults>
</compile_context>

<pallas_src>
import functools
import math

import jax
import jax.numpy as jnp
from jax import lax
from jax.experimental import pallas as pl
from jax.experimental.pallas import tpu as pltpu


def cam_att_batched_kernel(gamma_ref, x_ref, o_ref, *, mxu_dtype, approx_recip):
    """Per-batch C x C matmuls; used when block_b*C exceeds one MXU tile."""
    x = x_ref[...]                                      # (bt, C, N)
    xm = x.astype(mxu_dtype)
    # energy[b] = x[b] @ x[b]^T : contract the lane (N) axis directly.
    energy = lax.dot_general(
        xm, xm, dimension_numbers=(((2,), (2,)), ((0,), (0,))),
        preferred_element_type=jnp.float32)             # (bt, C, C)
    # softmax(rowmax(E) - E) == exp(rowmin(E) - E) / sum  (shift invariance).
    m = jnp.min(energy, axis=-1, keepdims=True)
    p = jnp.exp(m - energy)
    denom = jnp.sum(p, axis=-1, keepdims=True)
    attn = p * pl.reciprocal(denom, approx=approx_recip)
    out = lax.dot_general(
        attn.astype(mxu_dtype), xm,
        dimension_numbers=(((2,), (1,)), ((0,), (0,))),
        preferred_element_type=jnp.float32)             # (bt, C, N)
    gamma = gamma_ref[0]                                # scalar from SMEM
    o_ref[...] = (gamma * out + x.astype(jnp.float32)).astype(o_ref.dtype)


def cam_att_fold_kernel(gamma_ref, x_ref, o_ref, *, mxu_dtype, approx_recip,
                        channels, total_rows, mask_pad):
    """Small-C fast path: batch folded into the matmul M dimension.

    The x block is (block_b*C, N).  One near-square Gram matmul plus a
    block-diagonal mask replaces block_b tiny C x C matmuls; the resulting
    block-diagonal attention makes the second matmul a single
    (bR, bR) x (bR, N) MXU op that reproduces the batched bmm exactly.
    """
    x = x_ref[...]                                      # (bR, N), bR = block_b*C
    bR = x.shape[0]
    if mask_pad:
        # Ragged last batch block: zero the padded rows so stale-VMEM garbage
        # (possibly NaN/Inf) cannot leak into valid rows via 0 * NaN in the
        # folded matmuls.  Padded output rows are dropped on writeback anyway.
        r0 = pl.program_id(0) * bR
        rid = lax.broadcasted_iota(jnp.int32, (bR, 1), 0)
        x = jnp.where(rid < (total_rows - r0), x, 0.0)
    xm = x.astype(mxu_dtype)
    g = lax.dot_general(xm, xm, dimension_numbers=(((1,), (1,)), ((), ())),
                        preferred_element_type=jnp.float32)      # (bR, bR)
    if bR > channels:
        # Restrict the softmax to within-batch (block-diagonal) columns.
        rb = lax.broadcasted_iota(jnp.int32, (bR, bR), 0) // channels
        cb = lax.broadcasted_iota(jnp.int32, (bR, bR), 1) // channels
        blk = rb == cb
        m = jnp.min(jnp.where(blk, g, jnp.inf), axis=-1, keepdims=True)
        p = jnp.where(blk, jnp.exp(m - g), 0.0)
    else:                                               # single batch element
        m = jnp.min(g, axis=-1, keepdims=True)
        p = jnp.exp(m - g)
    denom = jnp.sum(p, axis=-1, keepdims=True)
    attn = p * pl.reciprocal(denom, approx=approx_recip)         # block-diag
    out = lax.dot_general(attn.astype(mxu_dtype), xm,
                          dimension_numbers=(((1,), (0,)), ((), ())),
                          preferred_element_type=jnp.float32)    # (bR, N)
    gamma = gamma_ref[0]
    o_ref[...] = (gamma * out + x.astype(jnp.float32)).astype(o_ref.dtype)


def _vmem_capacity_bytes():
    try:
        cap = int(getattr(pltpu.get_tpu_info(), "vmem_capacity_bytes", 0))
        if cap > 0:
            return cap
    except Exception:
        pass
    return 64 << 20      # conservative fallback (v7x per-core physical VMEM)


def cam_att(x, gamma, *, mxu_dtype=jnp.bfloat16, block_b=None):
    """x: (B, C, H, W), gamma: (1,) -> (B, C, H, W). Matches CamAtt.forward."""
    B, C, H, W = x.shape
    N = H * W

    itemsize = jnp.dtype(x.dtype).itemsize
    mxu_itemsize = jnp.dtype(mxu_dtype).itemsize
    # Resident VMEM bytes per batch element of one grid step: double-buffered
    # in + out slabs (2 + 2) in the input dtype, the mxu-dtype copy, and the
    # f32 out temporary.  (C x C temporaries are added below.)
    per_batch = C * N * (4 * itemsize + mxu_itemsize + 4)

    vmem_cap = _vmem_capacity_bytes()
    if block_b is None:
        budget = min(int(0.55 * vmem_cap), 40 << 20)
        block_b = max(1, min(B, budget // max(per_batch, 1)))
        if B >= 2:
            # Keep >= 2 grid steps: engages double-buffering and, on v7x, the
            # second TensorCore through the "parallel" batch axis.
            block_b = min(block_b, pl.cdiv(B, 2))
        if C <= 256:
            # Prefer the folded small-C MXU path: keep block_b*C within one
            # MXU tile and round down to a sublane-aligned (x8) row count.
            block_b = min(block_b, max(1, 256 // C))
            step = 8 // math.gcd(C, 8)
            if block_b >= step:
                block_b = (block_b // step) * step
    block_b = int(max(1, min(block_b, B)))
    grid_b = pl.cdiv(B, block_b)            # ragged last block is fine

    bC = block_b * C
    use_fold = ((bC <= 256) or (block_b == 1)) and (bC % 8 == 0 or bC == B * C)

    approx_recip = jnp.dtype(mxu_dtype) != jnp.dtype(jnp.float32)
    if use_fold:
        x_in = x.reshape(B * C, N)          # free: merges leading dims
        kernel = functools.partial(
            cam_att_fold_kernel, mxu_dtype=mxu_dtype, approx_recip=approx_recip,
            channels=C, total_rows=B * C, mask_pad=(B % block_b != 0))
        data_spec = pl.BlockSpec((bC, N), lambda b: (b, 0))
        out_shape = jax.ShapeDtypeStruct((B * C, N), x.dtype)
    else:
        x_in = x.reshape(B, C, N)
        kernel = functools.partial(
            cam_att_batched_kernel, mxu_dtype=mxu_dtype, approx_recip=approx_recip)
        data_spec = pl.BlockSpec((block_b, C, N), lambda b: (b, 0, 0))
        out_shape = jax.ShapeDtypeStruct((B, C, N), x.dtype)

    # Tightened footprint estimate for the scoped-VMEM request.
    cc_rows = bC if use_fold else C
    cc_count = 1 if use_fold else block_b
    est_vmem = block_b * per_batch + 4 * cc_count * cc_rows * cc_rows * 4 + (2 << 20)

    compiler_kwargs = dict(dimension_semantics=("parallel",))
    if est_vmem > (12 << 20):
        # Above the smallest default scoped-VMEM limits (16 MiB on v5e):
        # request what we need, but stay well under physical capacity.
        compiler_kwargs["vmem_limit_bytes"] = int(
            min(max(est_vmem, 16 << 20), int(0.75 * vmem_cap)))

    out_flat = pl.pallas_call(
        kernel,
        out_shape=out_shape,
        grid_spec=pltpu.PrefetchScalarGridSpec(
            num_scalar_prefetch=0,
            grid=(grid_b,),
            in_specs=[
                # gamma: tiny parameter, untiled, kept in SMEM.
                pl.BlockSpec(memory_space=pltpu.MemorySpace.SMEM),
                data_spec,
            ],
            out_specs=data_spec,
        ),
        compiler_params=pltpu.CompilerParams(**compiler_kwargs),
    )(gamma, x_in)

    return out_flat.reshape(B, C, H, W)


def cam_att_ref(x, gamma):
    """Pure-JAX reference mirroring the PyTorch forward (high precision)."""
    B, C, H, W = x.shape
    q = x.reshape(B, C, -1)
    energy = jnp.einsum("bcn,bkn->bck", q, q, precision=lax.Precision.HIGHEST)
    energy_new = jnp.max(energy, axis=-1, keepdims=True) - energy
    attn = jax.nn.softmax(energy_new, axis=-1)
    out = jnp.einsum("bck,bkn->bcn", attn, q,
                     precision=lax.Precision.HIGHEST).reshape(B, C, H, W)
    return gamma[0] * out + x


if __name__ == "__main__":
    key = jax.random.PRNGKey(0)
    B, C, H, W = 2, 4, 16, 16
    x = jax.random.normal(key, (B, C, H, W), dtype=jnp.float32)

    # 1) Module init state: gamma = Parameter(torch.zeros(1)) -> out == x.
    gamma0 = jnp.zeros((1,), dtype=jnp.float32)
    out0 = jax.block_until_ready(cam_att(x, gamma0))
    assert out0.shape == (B, C, H, W)
    assert jnp.allclose(out0, x, atol=1e-6, rtol=0.0)

    # 2) Non-trivial gamma: validate the attention path against the reference.
    gamma1 = jnp.ones((1,), dtype=jnp.float32)
    ref1 = cam_att_ref(x, gamma1)

    out_f32 = jax.block_until_ready(cam_att(x, gamma1, mxu_dtype=jnp.float32))
    assert bool(jnp.all(jnp.isfinite(out_f32)))
    assert jnp.allclose(out_f32, ref1, atol=1e-1, rtol=1e-1)

    out_bf16 = jax.block_until_ready(cam_att(x, gamma1))
    assert bool(jnp.all(jnp.isfinite(out_bf16)))
    assert jnp.allclose(out_bf16, ref1, atol=1e-1, rtol=1e-1)
    assert jnp.allclose(out_bf16, out_f32, atol=1e-1, rtol=1e-1)

    # 3) Ragged batch blocks + N not a multiple of 128 (exercises the no-pad
    #    path, the folded small-C kernel and in-kernel padded-row masking).
    B2, C2, H2, W2 = 3, 4, 10, 10
    x2 = jax.random.normal(jax.random.PRNGKey(1), (B2, C2, H2, W2), jnp.float32)
    ref2 = cam_att_ref(x2, gamma1)
    out2_f32 = jax.block_until_ready(cam_att(x2, gamma1, mxu_dtype=jnp.float32))
    assert bool(jnp.all(jnp.isfinite(out2_f32)))
    assert jnp.allclose(out2_f32, ref2, atol=5e-2, rtol=5e-2)
    out2_bf16 = jax.block_until_ready(cam_att(x2, gamma1))
    assert bool(jnp.all(jnp.isfinite(out2_bf16)))
    assert jnp.allclose(out2_bf16, ref2, atol=2e-1, rtol=2e-1)

    print("KERNEL_OK")
</pallas_src>

<mosaic_0001>
module attributes {stable_mosaic.version = 11 : i64} {
  func.func @cam_att_batched_kernel(%arg0: i32, %arg1: memref<1xf32, #tpu.memory_space<smem>>, %arg2: memref<1x4x256xf32, #tpu.memory_space<vmem>>, %arg3: memref<1x4x256xf32, #tpu.memory_space<vmem>>) attributes {dimension_semantics = [#tpu.dimension_semantics<parallel>], iteration_bounds = array<i64: 2>, scalar_prefetch = 0 : i64, scratch_operands = 0 : i64, tpu.core_type = #tpu.core_type<tc>, window_params = [{transform_indices = @transform_0, window_bounds = array<i64: 1>}, {transform_indices = @transform_1, window_bounds = array<i64: 1, 4, 256>}, {transform_indices = @transform_2, window_bounds = array<i64: 1, 4, 256>}]} {
    %c0 = arith.constant 0 : index
    %c0_0 = arith.constant 0 : index
    %c0_1 = arith.constant 0 : index
    %0 = vector.load %arg2[%c0, %c0_0, %c0_1] : memref<1x4x256xf32, #tpu.memory_space<vmem>>, vector<1x4x256xf32>
    %1 = arith.truncf %0 : vector<1x4x256xf32> to vector<1x4x256xbf16>
    %cst = arith.constant dense<0.000000e+00> : vector<1x4x4xf32>
    %2 = tpu.matmul %1, %1, %cst {dimension_numbers = #tpu.dot_dimension_numbers<[2], [2], [1], [1], [0, 0, 0, 1, 1, 1], [0], [0]>} : vector<1x4x256xbf16>, vector<1x4x256xbf16>, vector<1x4x4xf32> -> vector<1x4x4xf32>
    %cst_2 = arith.constant dense<0x7F800000> : vector<1x4xf32>
    %3 = vector.multi_reduction <minimumf>, %2, %cst_2 [2] : vector<1x4x4xf32> to vector<1x4xf32>
    %4 = vector.shape_cast %3 : vector<1x4xf32> to vector<1x4x1xf32>
    %5 = vector.broadcast %4 : vector<1x4x1xf32> to vector<1x4x4xf32>
    %6 = arith.subf %5, %2 : vector<1x4x4xf32>
    %7 = math.exp %6 : vector<1x4x4xf32>
    %cst_3 = arith.constant dense<0.000000e+00> : vector<1x4xf32>
    %8 = vector.multi_reduction <add>, %7, %cst_3 [2] : vector<1x4x4xf32> to vector<1x4xf32>
    %9 = vector.shape_cast %8 : vector<1x4xf32> to vector<1x4x1xf32>
    %10 = tpu.reciprocal %9 {approx = true} : vector<1x4x1xf32> -> vector<1x4x1xf32>
    %11 = vector.broadcast %10 : vector<1x4x1xf32> to vector<1x4x4xf32>
    %12 = arith.mulf %7, %11 : vector<1x4x4xf32>
    %13 = arith.truncf %12 : vector<1x4x4xf32> to vector<1x4x4xbf16>
    %cst_4 = arith.constant dense<0.000000e+00> : vector<1x4x256xf32>
    %14 = tpu.matmul %13, %1, %cst_4 {dimension_numbers = #tpu.dot_dimension_numbers<[2], [1], [1], [2], [0, 0, 0, 1, 1, 2], [0], [0]>} : vector<1x4x4xbf16>, vector<1x4x256xbf16>, vector<1x4x256xf32> -> vector<1x4x256xf32>
    %c0_5 = arith.constant 0 : index
    %15 = memref.load %arg1[%c0_5] : memref<1xf32, #tpu.memory_space<smem>>
    %16 = vector.broadcast %15 : f32 to vector<1x4x256xf32>
    %17 = arith.mulf %16, %14 : vector<1x4x256xf32>
    %18 = arith.addf %17, %0 : vector<1x4x256xf32>
    %c0_6 = arith.constant 0 : index
    %c0_7 = arith.constant 0 : index
    %c0_8 = arith.constant 0 : index
    %19 = vector.load %arg3[%c0_6, %c0_7, %c0_8] : memref<1x4x256xf32, #tpu.memory_space<vmem>>, vector<1x4x256xf32>
    tpu.vector_store %arg3[%c0_6, %c0_7, %c0_8], %18 {strides = array<i32>} : memref<1x4x256xf32, #tpu.memory_space<vmem>>, vector<1x4x256xf32>,
    return
  }
  func.func @transform_0(%arg0: i32) -> i32 {
    %c0_i32 = arith.constant 0 : i32
    %c0_i32_0 = arith.constant 0 : i32
    return %c0_i32 : i32
  }
  func.func @transform_1(%arg0: i32) -> (i32, i32, i32) {
    %c0_i32 = arith.constant 0 : i32
    %c0_i32_0 = arith.constant 0 : i32
    %c0_i32_1 = arith.constant 0 : i32
    return %arg0, %c0_i32, %c0_i32_0 : i32, i32, i32
  }
  func.func @transform_2(%arg0: i32) -> (i32, i32, i32) {
    %c0_i32 = arith.constant 0 : i32
    %c0_i32_0 = arith.constant 0 : i32
    %c0_i32_1 = arith.constant 0 : i32
    return %arg0, %c0_i32, %c0_i32_0 : i32, i32, i32
  }
}

</mosaic_0001>

<bundles_post_ra>
// kernel: tpu_custom_call.1
= control target key start
LH: loop header
LB: loop body
LE: loop exit
PB: predicated region body
PF: predicated region fallthrough
CT: control target
= control target key end

     0   :  { %s675_s0 = inlined_call_operand.<no memory space> [shape: f32[1], index: 0, kind: input, shape index: {}]   ;;  %s676_s1 = inlined_call_operand.hbm [shape: f32[2,4,256], index: 1, kind: input, shape index: {}]   ;;  %s677_s2 = inlined_call_operand.hbm [shape: f32[2,4,256], index: 2, kind: output, shape index: {}]  }
   0x1   :  { %7 = sst [smem:[#allocation2]] %s675_s0 }
   0x2   :  { %8 = vsyncpa [#allocation4], 0 }
   0x3   :  { %10 = vsyncpa [#allocation4 + $0x1], 0 }
   0x4   :  { %11 = vsyncpa [#allocation5], 0 }
   0x5   :  { %13 = vsyncpa [#allocation5 + $0x1], 0  ;;  %s544_s11 = smov 0   ;;  %s546_s12 = smov 0  }
   0x6   :  { %s548_s13 = smov 0   ;;  %s550_s14 = smov 0  }
   0x7 LB: > { %s565_s0 = sadd.s32 4294967295, %s524_s14   ;;  %s360_s15 = sadd.s32 4294967294, %s524_s14   ;;  %s524_s14 = sphi %s550_s14, %s687_s14   ;;  %s520_s13 = sphi %s548_s13, %s686_s13   ;;  %s516_s12 = sphi %s546_s12, %s685_s12   ;;  %s512_s11 = sphi %s544_s11, %s684_s11  }
   0x8   : > { %s569_s16 = sadd.s32 1, %s524_s14   ;;  %s47_s17 = sadd.s32 1, %s520_s13 }
   0x9   : > { %s44_s18 = ssub.s32 %s524_s14, %s569_s16  ;;  %p54_p0 = scmp.ne.s32.totalorder %s520_s13, %s516_s12 }
   0xa   : > { %p45_p1 = scmp.eq.s32.totalorder %s44_s18, 0  ;;  %p55_p2 = scmp.eq.s32.totalorder %s524_s14, 0 }
   0xb   : > { %p60_p3 = scmp.ne.s32.totalorder %s516_s12, %s512_s11  ;;  %p61_p4 = scmp.eq.s32.totalorder %s565_s0, 0 }
   0xc   : > { %s581_s19 = scalar_select %p45_p1, %s520_s13, %s47_s17  }
   0xd   : > { %p583_p5 = por %p55_p2, %p54_p0  ;;  %p587_p6 = por %p61_p4, %p60_p3 }
   0xe   : > { %p84_p7 = scmp.eq.s32.totalorder %s565_s0, 1  ;;  %p90_p8 = scmp.eq.s32.totalorder %s360_s15, 1 }
   0xf   : > { %p390_p10 = scmp.lt.s32.totalorder %s524_s14, 2  ;;  %s113_s24 = sand.u32 1, %s520_s13  }
  0x10   : > { %p594_p11 = por %p84_p7, %p54_p0  ;;  %p598_p12 = por %p90_p8, %p60_p3 }
  0x11   : > { %s376_s25 = sshll.u32 %s524_s14, 3  ;;  %s363_s26 = sshll.u32 %s113_s24, 3 }
  0x12   : > { %s122_s29 = scalar_lea.hbm %s676_s1, %s376_s25  ;;  %s117_s3 = scalar_lea.vmem [#allocation3], %s363_s26 }
  0x13   : > { %s124_s30 = sshll.u32 %s122_s29, 4  ;;  %s126_s4 = sshll.u32 %s117_s3, 4  ;;  %s125_s30 = int_to_ptr.hbm [resolvable:$true] %s124_s30  ;;  %s127_s4 = int_to_ptr.vmem [resolvable:$true] %s126_s4 }
  0x14   : > { %p609_p13 = pnand %p390_p10, %p583_p5  ;;  %p366_p0 = scmp.ge.s32.totalorder %s524_s14, 1 }
  0x15   : > { %p131_p1 = scmp.lt.s32.totalorder %s524_s14, 3  ;;  %s114_s6 = scalar_lea.sflag [#allocation4], %s113_s24 }
  0x16   : > { %s428_s7 = sshra.s32 %s125_s30, 4  ;;  %p432_p3 = pneg %p609_p13  ;;  %s429_s7 = int_to_ptr.hbm [resolvable:$true] %s428_s7 }
  0x17   : > { %s430_s8 = scalar_lea.hbm %s429_s7, 8  ;;  %s435_s15 = scalar_lea.hbm %s676_s1, 16 }
  0x18   : > { %p431_p2 = scmp.ne.s32.totalorder %s429_s7, %s430_s8  ;;  %p436_p5 = scmp.lt.s32.totalorder %s429_s7, %s676_s1 }
  0x19   : > { %p437_p8 = scmp.lt.s32.totalorder %s435_s15, %s430_s8 }
  0x1a   : > { %p433_p4 = pnand %p432_p3, %p431_p2 }
  0x1b   : > { %p438_p10 = por %p437_p8, %p436_p5 }
  0x1c   : > { %p434_p7 = pneg %p433_p4 }
  0x1e   : > { %p439_p9 = pnand %p438_p10, %p434_p7 }
  0x20   : > { %442 = shalt.err (!%p439_p9)
}
  0x21   : > { %385 = dma.hbm_to_vmem [thread:$0]  (!%p609_p13), %s125_s30, 128, %s127_s4, %s114_s6  }
  0x22   : > { %p132_p2 = pnand %p366_p0, %p131_p1 }
  0x23   : > { %s630_s20 = sand.u32 (!%p132_p2), 1, %s516_s12  }
  0x24   : > { %135 = sbr.rel (%p132_p2) target bundleno = 590 (0x24e), region = 28  ;;  %s367_s24 = sshll.u32 (!%p132_p2), %s630_s20, 3 }
  0x25   : > { %s138_s25 = scalar_lea.sflag (!%p132_p2), [#allocation4], %s630_s20  ;;  %s141_s26 = scalar_lea.vmem (!%p132_p2), [#allocation3], %s367_s24 }
  0x29   : > { %503 = dma.done.wait (%p587_p6), %s138_s25, 128  }
  0x2a   : > { %505 = vsyncadd (%p587_p6), %s138_s25, 4294967168  ;;  %v164_v0 = vld [vmem:[%s141_s26] sm:$0xff]  ;;  %vm205_vm0 = vcmask 27648   ;;  %vm222_vm1 = vcmask 1041408   ;;  %vm218_vm2 = vcmask 31744   ;;  %s255_s21 = sld [smem:[#allocation2]] }
  0x2b   : > { %166 = vst [vmem:[#allocation1] ss:$2 sm:$0xff] %v164_v0  ;;  %s377_s27 = sshll.u32 %s565_s0, 3  ;;  %s162_s3 = scalar_lea.vmem [#allocation6], %s367_s24  ;;  %vm269_vm3 = vcmask 1043456  }
  0x2c   : > { %s285_s30 = scalar_lea.hbm %s677_s2, %s377_s27  ;;  %s287_s4 = sshll.u32 %s162_s3, 4  ;;  %s288_s4 = int_to_ptr.vmem [resolvable:$true] %s287_s4 }
  0x2d   : > { %s289_s5 = sshll.u32 %s285_s30, 4  ;;  %s274_s0 = scalar_lea.sflag [#allocation5], %s630_s20  ;;  %s290_s5 = int_to_ptr.hbm [resolvable:$true] %s289_s5 }
  0x2e   : > { %s472_s6 = sshra.s32 %s290_s5, 4  ;;  %s478_s10 = scalar_lea.hbm %s677_s2, 16  ;;  %s473_s6 = int_to_ptr.hbm [resolvable:$true] %s472_s6 }
  0x2f   : > { %s474_s7 = scalar_lea.hbm %s473_s6, 8  ;;  %p479_p0 = scmp.lt.s32.totalorder %s473_s6, %s677_s2 }
  0x30   : > { %v256_v25 = vstv %s255_s21  ;;  %p475_p6 = scmp.ne.s32.totalorder %s473_s6, %s474_s7  ;;  %p480_p1 = scmp.lt.s32.totalorder %s478_s10, %s474_s7 }
  0x32   : > { %v167_v1 = vld.sshfl [vmem:[#allocation1] sm:$0xff pattern:$0x75316420]  ;;  %v168_v2 = vld.sshfl [vmem:[#allocation1 + $0x8] sm:$0xff pattern:$0x75316420]  ;;  %p476_p9 = pnand %p475_p6, %p594_p11  ;;  %p481_p3 = por %p480_p1, %p479_p0 }
  0x33   : > { %v171_v3 = vpack.c.bf16 %v168_v2, %v167_v1  ;;  %259 = vst [vmem:[#allocation1] ss:$2 sm:$0xff] %v164_v0 }
  0x34   : > { %p477_p13 = pneg %p476_p9 }
  0x35   : > { %v173_v4 = vunpack.c.l.b16 %v171_v3  ;;  %v174_v5 = vunpack.c.h.b16 %v171_v3 }
  0x36   : > { %p482_p4 = pnand %p481_p3, %p477_p13 }
  0x37   : > { %v175_v6 = vpack.c.b16 %v173_v4, %v173_v4  ;;  %v176_v7 = vpack.c.b16 %v174_v5, %v174_v5 }
  0x39   : > { %186 = vmatpush.bf16.xpose.msra.mxu0 %v175_v6  ;;  %199 = vmatpush.bf16.xpose.msra.mxu1 %v176_v7  ;;  %v224_v19 = vsel %vm222_vm1, %v175_v6, 0  ;;  %v227_v20 = vsel %vm222_vm1, %v176_v7, 0 }
  0x3a   : > { %236 = vmatpush.bf16.msra.mxu2 %v224_v19  ;;  %249 = vmatpush.bf16.msra.mxu3 %v227_v20  ;;  %v261_v28 = vld.sshfl [vmem:[#allocation1 + $0x8] sm:$0xff pattern:$0x75316420]  ;;  %v260_v31 = vld.sshfl [vmem:[#allocation1] sm:$0xff pattern:$0x75316420] }
  0x40   : > { %187 = vmatmul.bf16.vlgmr.msra.gmra.mxu0 %v175_v6  ;;  %200 = vmatmul.bf16.vlgmr.msra.gmra.mxu1 %v176_v7 }
  0xbd   : > { %v188_v8 = vpop.f32.mrf.mxu0  ;;  %v201_v9 = vpop.f32.mrf.mxu1 }
  0xbe   : > { %v202_v10 = vadd.f32 %v201_v9, %v188_v8 }
  0xc0   : > { %v206_v11 = vsel %vm205_vm0, %v202_v10, inf }
  0xc1   : > { %207 = vmin.xlane.f32.xlu0 %v206_v11 }
  0xc5   : > { %v190_v12 = vpop.f32.mrf.mxu0  ;;  %v203_v13 = vpop.f32.mrf.mxu1 }
 0x134   : > { %v208_v14 = vpop.xlane.xlu0 %207 }
 0x135   : > { %v209_v15 = vsub.f32 %v208_v14, %v202_v10 }
 0x137   : > { %v210_v16 = vmul.f32 1.442695, %v209_v15 }
 0x139   : > { %424 = vpow2.f32 %v210_v16 }
 0x13f   : > { %v425_v17 = vpop.eup %424 }
 0x140   : > { %v212_v18 = vsel %vm205_vm0, %v425_v17, 0.0 }
 0x141   : > { %213 = vadd.xlane.f32.xlu0 %v212_v18 }
 0x1b4   : > { %v214_v21 = vpop.xlane.xlu0 %213 }
 0x1b5   : > { %426 = vrcp.f32 %v214_v21 }
 0x1bb   : > { %v427_v22 = vpop.eup %426 }
 0x1bc   : > { %v216_v23 = vmul.f32 %v427_v22, %v425_v17 }
 0x1be   : > { %v217_v24 = vpack.c.bf16 %v216_v23, %v216_v23 }
 0x1c0   : > { %369 = vmatmul.msk.bf16.vlgmr.msra.gmra.mxu2 %vm218_vm2, %v217_v24  ;;  %370 = vmatmul.msk.bf16.vlgmr.msra.gmra.mxu3 %vm218_vm2, %v217_v24 }
 0x243   : > { %v238_v26 = vpop.f32.mrf.mxu2  ;;  %v251_v27 = vpop.f32.mrf.mxu3 }
 0x244   : > { %v257_v29 = vmul.f32 %v256_v25, %v238_v26  ;;  %v258_v30 = vmul.f32 %v256_v25, %v251_v27 }
 0x246   : > { %v265_v32 = vadd.f32 %v261_v28, %v258_v30  ;;  %v264_v33 = vadd.f32 %v260_v31, %v257_v29 }
 0x248   : > { %v268_v34 = vrot.slane %v265_v32, 4 }
 0x24a   : > { %v270_v35 = vsel %vm269_vm3, %v264_v33, %v268_v34 }
 0x24b   : > { %v240_v36 = vpop.f32.mrf.mxu2  ;;  %v253_v37 = vpop.f32.mrf.mxu3  ;;  %272 = vst [vmem:[%s162_s3] sm:$0xff] %v270_v35 }
 0x24c   : > { %485 = shalt.err (!%p482_p4)
}
 0x24d   : > { %380 = dma.vmem_to_hbm [thread:$0]  (%p594_p11), %s288_s4, 128, %s290_s5, %s274_s0  }
 0x24e PF: > { %s301_s18 = sand.u32 1, %s512_s11   ;;  %p683_p7 = scmp.ge.s32.totalorder %s524_s14, 2 }
 0x24f   : > { %s302_s20 = scalar_lea.sflag [#allocation5], %s301_s18 }
 0x250   : > { %p387_p5 = pnand %p683_p7, %p598_p12 }
 0x252   : > { %p388_p8 = pneg %p387_p5 }
 0x254   : > { %507 = dma.done.wait (%p388_p8), %s302_s20, 128  }
 0x255   : > { %509 = vsyncadd (%p388_p8), %s302_s20, 4294967168  ;;  %p16_p10 = scmp.ge.s32.totalorder %s569_s16, 4   ;;  %s684_s11 = smov %s516_s12 }
 0x256   : > { %s685_s12 = smov %s520_s13  ;;  %s686_s13 = smov %s581_s19 }
 0x257   : > { %s687_s14 = smov %s569_s16  ;;  %18 = sbr.rel (!%p16_p10) target bundleno = 7 (0x7), region = 73 }
 0x25c   :  { %308 = vsyncpa [#allocation4], 1 }
 0x25d   :  { %310 = vsyncpa [#allocation4 + $0x1], 1 }
 0x25e   :  { %311 = vsyncpa [#allocation5], 1 }
 0x25f   :  { %313 = vsyncpa [#allocation5 + $0x1], 1 }

</bundles_post_ra>
